<compile_context>
chip_gen: v7x
topology: tpu7x:2x2x1
jax: 0.10.0
libtpu: 0.0.40
codegen_flags: <defaults>
</compile_context>

<pallas_src>
import math
import functools

import jax
import jax.numpy as jnp
from jax import lax
from jax.experimental import pallas as pl
from jax.experimental.pallas import tpu as pltpu


def _round_up(v, m):
    return ((v + m - 1) // m) * m


def _aam_kernel(x_ref, w_ref, label_ref, o_ref, *,
                cos_m, sin_m, th, mm, s, easy_margin, block_c, class_axis):
    ci = pl.program_id(class_axis)  # class-block index (static axis choice)

    # cosine = xn @ wn  -> (TB, TC); bf16 operands, f32 MXU accumulation.
    cosine = jnp.dot(x_ref[...], w_ref[...], preferred_element_type=jnp.float32)

    # One-hot mask via GLOBAL class index compare (single vsel per element).
    label = label_ref[...]                                        # (TB, 1) int32
    cls_idx = ci * block_c + lax.broadcasted_iota(jnp.int32, cosine.shape, 1)
    mask = cls_idx == label                                       # (TB, TC)

    # Margin math only on the selected label logit per row (TB, 1):
    # everything else of the tile keeps plain cosine.
    sel_cos = jnp.sum(jnp.where(mask, cosine, 0.0), axis=-1, keepdims=True)
    sine = jnp.sqrt(jnp.clip(1.0 - sel_cos * sel_cos, 0.0, 1.0))
    phi = sel_cos * cos_m - sine * sin_m
    if easy_margin:
        phi = jnp.where(sel_cos > 0.0, phi, sel_cos)
    else:
        phi = jnp.where(sel_cos - th > 0.0, phi, sel_cos - mm)

    o_ref[...] = (jnp.where(mask, phi, cosine) * s).astype(o_ref.dtype)


def aam_forward(x, weight, label, *, m=0.3, s=15.0, easy_margin=False,
                block_b=256, block_c=2048):
    """x: (B, in_feats) f32; weight: (n_classes, in_feats) f32; label: (B,) int."""
    B, F = x.shape
    C, F2 = weight.shape
    assert F == F2

    eps = 1e-12

    # --- Wrapper-side pre-normalization (single XLA pass each), bf16 streams. ---
    xf = x.astype(jnp.float32)
    xn = xf * lax.rsqrt(jnp.maximum(jnp.sum(xf * xf, axis=1, keepdims=True),
                                    eps * eps))
    wf = weight.astype(jnp.float32)
    wn = wf * lax.rsqrt(jnp.maximum(jnp.sum(wf * wf, axis=1, keepdims=True),
                                    eps * eps))

    # Lane-dense, MXU-friendly tiling.  256-aligned K for v6e/v7x when F > 128.
    F_pad = _round_up(F, 256) if F > 128 else _round_up(F, 128)
    TB = min(block_b, _round_up(B, 16))      # bf16 sublane packing (16, 128)
    TC = min(block_c, _round_up(C, 128))
    B_pad = _round_up(B, TB)
    C_pad = _round_up(C, TC)

    # Zero padding is harmless: zero feature columns don't change the dot,
    # zero weight columns produce logits sliced off below, padded batch rows
    # are sliced off, and padded labels (-1) never match a class index.
    x_p = jnp.pad(xn, ((0, B_pad - B), (0, F_pad - F))).astype(jnp.bfloat16)
    # Pre-transposed normalized weight: (F_pad, C_pad) bf16 -> plain (M,K)x(K,N).
    w_p = jnp.pad(wn, ((0, C_pad - C), (0, F_pad - F))).astype(jnp.bfloat16).T
    label_p = jnp.pad(label.astype(jnp.int32).reshape(B, 1),
                      ((0, B_pad - B), (0, 0)), constant_values=-1)

    n_bb = B_pad // TB
    n_cb = C_pad // TC

    # Adaptive grid order: pick whichever axis ordering re-streams fewer bytes.
    elems_class_outer = C_pad * F_pad + n_cb * B_pad * F_pad   # x re-streamed
    elems_batch_outer = B_pad * F_pad + n_bb * C_pad * F_pad   # w re-streamed
    batch_outer = elems_batch_outer <= elems_class_outer

    if batch_outer:
        grid = (n_bb, n_cb)
        class_axis = 1
        x_map = lambda bi, ci: (bi, 0)
        w_map = lambda bi, ci: (0, ci)
        l_map = lambda bi, ci: (bi, 0)
        o_map = lambda bi, ci: (bi, ci)
        stream_elems = elems_batch_outer
    else:
        grid = (n_cb, n_bb)
        class_axis = 0
        x_map = lambda ci, bi: (bi, 0)
        w_map = lambda ci, bi: (0, ci)
        l_map = lambda ci, bi: (bi, 0)
        o_map = lambda ci, bi: (bi, ci)
        stream_elems = elems_class_outer

    kernel = functools.partial(
        _aam_kernel,
        cos_m=math.cos(m),
        sin_m=math.sin(m),
        th=math.cos(math.pi - m),
        mm=math.sin(math.pi - m) * m,
        s=float(s),
        easy_margin=bool(easy_margin),
        block_c=TC,
        class_axis=class_axis,
    )

    # VMEM budget: double-buffered bf16 input tiles + f32 output tiles.
    tile_bytes = (2 * TB * F_pad * 2        # x tiles (bf16)
                  + 2 * F_pad * TC * 2      # weight tiles (bf16)
                  + 2 * TB * TC * 4         # output tiles (f32)
                  + 2 * TB * 4)             # label tiles
    # Cap at 48 MiB so it is safe on v7x (64 MiB physical) and fine elsewhere.
    vmem_limit = int(min(48 * 2 ** 20, max(32 * 2 ** 20, 2 * tile_bytes)))

    out_padded = pl.pallas_call(
        kernel,
        out_shape=jax.ShapeDtypeStruct((B_pad, C_pad), jnp.float32),
        grid=grid,
        in_specs=[
            pl.BlockSpec((TB, F_pad), x_map),      # normalized x (bf16)
            pl.BlockSpec((F_pad, TC), w_map),      # normalized, transposed weight (bf16)
            pl.BlockSpec((TB, 1), l_map),          # labels
        ],
        out_specs=pl.BlockSpec((TB, TC), o_map),
        compiler_params=pltpu.CompilerParams(
            dimension_semantics=("parallel", "parallel"),
            vmem_limit_bytes=vmem_limit,
        ),
        cost_estimate=pl.CostEstimate(
            flops=2 * B_pad * C_pad * F_pad,
            transcendentals=B_pad * n_cb,                     # one sqrt per row/class-block
            bytes_accessed=2 * stream_elems                   # bf16 input streams
                           + 4 * B_pad * C_pad                # f32 output
                           + 4 * B_pad * max(n_cb, n_bb),     # labels (negligible)
        ),
    )(x_p, w_p, label_p)

    return out_padded[:B, :C]


def _reference(x, weight, label, *, m=0.3, s=15.0, easy_margin=False,
               bf16_matmul=False):
    """Pure-JAX reference mirroring the PyTorch forward.

    x / max(||x||, eps) is written as x * rsqrt(max(||x||^2, eps^2)) (identical).
    With bf16_matmul=True the normalized operands are rounded to bf16 before the
    matmul (f32 accumulation), matching the kernel's MXU path exactly.
    """
    eps = 1e-12
    xn = x * lax.rsqrt(jnp.maximum(jnp.sum(x * x, axis=1, keepdims=True), eps * eps))
    wn = weight * lax.rsqrt(jnp.maximum(jnp.sum(weight * weight, axis=1, keepdims=True),
                                        eps * eps))
    if bf16_matmul:
        xn = xn.astype(jnp.bfloat16)
        wn = wn.astype(jnp.bfloat16)
    cosine = jnp.dot(xn, wn.T, preferred_element_type=jnp.float32)
    sine = jnp.sqrt(jnp.clip(1.0 - cosine ** 2, 0.0, 1.0))
    phi = cosine * math.cos(m) - sine * math.sin(m)
    if easy_margin:
        phi = jnp.where(cosine > 0, phi, cosine)
    else:
        th = math.cos(math.pi - m)
        mm = math.sin(math.pi - m) * m
        phi = jnp.where(cosine - th > 0, phi, cosine - mm)
    one_hot = jax.nn.one_hot(label, cosine.shape[1], dtype=cosine.dtype)
    return (one_hot * phi + (1.0 - one_hot) * cosine) * s


if __name__ == "__main__":
    B, in_feats, n_classes = 8, 32, 10

    key = jax.random.PRNGKey(0)
    kx, kw, kl = jax.random.split(key, 3)

    x = jax.random.normal(kx, (B, in_feats), dtype=jnp.float32)

    # xavier_normal_ init (gain=1): std = sqrt(2 / (fan_in + fan_out))
    std = math.sqrt(2.0 / (in_feats + n_classes))
    weight = std * jax.random.normal(kw, (n_classes, in_feats), dtype=jnp.float32)

    label = jax.random.randint(kl, (B,), 0, n_classes, dtype=jnp.int32)

    out = aam_forward(x, weight, label, m=0.3, s=15.0, easy_margin=False)
    out = jax.block_until_ready(out)
    assert out.shape == (B, n_classes)

    # Tight check vs a reference using the same bf16-operand / f32-accumulate
    # matmul as the kernel's MXU path.
    ref_bf16 = _reference(x, weight, label, m=0.3, s=15.0, easy_margin=False,
                          bf16_matmul=True)
    assert jnp.allclose(out, ref_bf16, atol=1e-2, rtol=1e-2), "mismatch vs bf16 reference"

    # Loose check vs the exact f32 PyTorch-style reference (bf16 rounding bound).
    ref_f32 = _reference(x, weight, label, m=0.3, s=15.0, easy_margin=False,
                         bf16_matmul=False)
    assert jnp.allclose(out, ref_f32, atol=1e-1, rtol=1e-1), "mismatch vs f32 reference"

    print("KERNEL_OK")
</pallas_src>

<mosaic_0001>
module attributes {stable_mosaic.version = 11 : i64} {
  func.func @_aam_kernel(%arg0: i32, %arg1: i32, %arg2: memref<16x128xbf16, #tpu.memory_space<vmem>>, %arg3: memref<128x128xbf16, #tpu.memory_space<vmem>>, %arg4: memref<16x1xi32, #tpu.memory_space<vmem>>, %arg5: memref<16x128xf32, #tpu.memory_space<vmem>>) attributes {dimension_semantics = [#tpu.dimension_semantics<parallel>, #tpu.dimension_semantics<parallel>], iteration_bounds = array<i64: 1, 1>, scalar_prefetch = 0 : i64, scratch_operands = 0 : i64, tpu.core_type = #tpu.core_type<tc>, window_params = [{transform_indices = @transform_0, window_bounds = array<i64: 16, 128>}, {transform_indices = @transform_1, window_bounds = array<i64: 128, 128>}, {transform_indices = @transform_2, window_bounds = array<i64: 16, 1>}, {transform_indices = @transform_3, window_bounds = array<i64: 16, 128>}]} {
    %c0 = arith.constant 0 : index
    %c0_0 = arith.constant 0 : index
    %0 = vector.load %arg2[%c0, %c0_0] : memref<16x128xbf16, #tpu.memory_space<vmem>>, vector<16x128xbf16>
    %c0_1 = arith.constant 0 : index
    %c0_2 = arith.constant 0 : index
    %1 = vector.load %arg3[%c0_1, %c0_2] : memref<128x128xbf16, #tpu.memory_space<vmem>>, vector<128x128xbf16>
    %cst = arith.constant dense<0.000000e+00> : vector<16x128xf32>
    %2 = tpu.matmul %0, %1, %cst {dimension_numbers = #tpu.dot_dimension_numbers<[1], [0], [0], [1], [0, 0, 1, 1], [], []>} : vector<16x128xbf16>, vector<128x128xbf16>, vector<16x128xf32> -> vector<16x128xf32>
    %c0_3 = arith.constant 0 : index
    %c0_4 = arith.constant 0 : index
    %3 = vector.load %arg4[%c0_3, %c0_4] : memref<16x1xi32, #tpu.memory_space<vmem>>, vector<16x1xi32>
    %c128_i32 = arith.constant 128 : i32
    %4 = arith.muli %arg1, %c128_i32 : i32
    %5 = tpu.iota {dimensions = array<i32: 1>} : vector<16x128xi32>
    %6 = vector.broadcast %4 : i32 to vector<16x128xi32>
    %7 = arith.addi %6, %5 : vector<16x128xi32>
    %8 = vector.broadcast %3 : vector<16x1xi32> to vector<16x128xi32>
    %9 = arith.cmpi eq, %7, %8 : vector<16x128xi32>
    %cst_5 = arith.constant 0.000000e+00 : f32
    %10 = vector.broadcast %cst_5 : f32 to vector<16x128xf32>
    %11 = arith.select %9, %2, %10 : vector<16x128xi1>, vector<16x128xf32>
    %cst_6 = arith.constant dense<0.000000e+00> : vector<16xf32>
    %12 = vector.multi_reduction <add>, %11, %cst_6 [1] : vector<16x128xf32> to vector<16xf32>
    %13 = vector.shape_cast %12 : vector<16xf32> to vector<16x1xf32>
    %14 = arith.mulf %13, %13 : vector<16x1xf32>
    %cst_7 = arith.constant 1.000000e+00 : f32
    %15 = vector.broadcast %cst_7 : f32 to vector<16x1xf32>
    %16 = arith.subf %15, %14 : vector<16x1xf32>
    %cst_8 = arith.constant 0.000000e+00 : f32
    %cst_9 = arith.constant 1.000000e+00 : f32
    %17 = vector.broadcast %cst_8 : f32 to vector<16x1xf32>
    %18 = arith.maximumf %17, %16 : vector<16x1xf32>
    %19 = vector.broadcast %cst_9 : f32 to vector<16x1xf32>
    %20 = arith.minimumf %19, %18 : vector<16x1xf32>
    %21 = math.sqrt %20 : vector<16x1xf32>
    %cst_10 = arith.constant 0.955336511 : f32
    %22 = vector.broadcast %cst_10 : f32 to vector<16x1xf32>
    %23 = arith.mulf %13, %22 : vector<16x1xf32>
    %cst_11 = arith.constant 0.295520216 : f32
    %24 = vector.broadcast %cst_11 : f32 to vector<16x1xf32>
    %25 = arith.mulf %21, %24 : vector<16x1xf32>
    %26 = arith.subf %23, %25 : vector<16x1xf32>
    %cst_12 = arith.constant -0.955336511 : f32
    %27 = vector.broadcast %cst_12 : f32 to vector<16x1xf32>
    %28 = arith.subf %13, %27 : vector<16x1xf32>
    %cst_13 = arith.constant 0.000000e+00 : f32
    %29 = vector.broadcast %cst_13 : f32 to vector<16x1xf32>
    %30 = arith.cmpf ogt, %28, %29 : vector<16x1xf32>
    %cst_14 = arith.constant 0.0886560603 : f32
    %31 = vector.broadcast %cst_14 : f32 to vector<16x1xf32>
    %32 = arith.subf %13, %31 : vector<16x1xf32>
    %33 = arith.select %30, %26, %32 : vector<16x1xi1>, vector<16x1xf32>
    %34 = vector.shape_cast %33 : vector<16x1xf32> to vector<16x1xf32>
    %35 = vector.broadcast %34 : vector<16x1xf32> to vector<16x128xf32>
    %36 = arith.select %9, %35, %2 : vector<16x128xi1>, vector<16x128xf32>
    %cst_15 = arith.constant 1.500000e+01 : f32
    %37 = vector.broadcast %cst_15 : f32 to vector<16x128xf32>
    %38 = arith.mulf %36, %37 : vector<16x128xf32>
    %c0_16 = arith.constant 0 : index
    %c0_17 = arith.constant 0 : index
    %39 = vector.load %arg5[%c0_16, %c0_17] : memref<16x128xf32, #tpu.memory_space<vmem>>, vector<16x128xf32>
    tpu.vector_store %arg5[%c0_16, %c0_17], %38 {strides = array<i32>} : memref<16x128xf32, #tpu.memory_space<vmem>>, vector<16x128xf32>,
    return
  }
  func.func @transform_0(%arg0: i32, %arg1: i32) -> (i32, i32) {
    %c0_i32 = arith.constant 0 : i32
    %c0_i32_0 = arith.constant 0 : i32
    return %arg0, %c0_i32 : i32, i32
  }
  func.func @transform_1(%arg0: i32, %arg1: i32) -> (i32, i32) {
    %c0_i32 = arith.constant 0 : i32
    %c0_i32_0 = arith.constant 0 : i32
    return %c0_i32, %arg1 : i32, i32
  }
  func.func @transform_2(%arg0: i32, %arg1: i32) -> (i32, i32) {
    %c0_i32 = arith.constant 0 : i32
    %c0_i32_0 = arith.constant 0 : i32
    return %arg0, %c0_i32 : i32, i32
  }
  func.func @transform_3(%arg0: i32, %arg1: i32) -> (i32, i32) {
    %c0_i32 = arith.constant 0 : i32
    return %arg0, %arg1 : i32, i32
  }
}

</mosaic_0001>

<bundles_post_ra>
// kernel: tpu_custom_call.1
= control target key start
LH: loop header
LB: loop body
LE: loop exit
PB: predicated region body
PF: predicated region fallthrough
CT: control target
= control target key end

     0   :  { %8 = vsyncpa [#allocation3], 0  ;;  %s402_s0 = inlined_call_operand.vmem [shape: bf16[16,128], index: 0, kind: input, shape index: {}]   ;;  %s403_s1 = inlined_call_operand.hbm [shape: bf16[128,128], index: 1, kind: input, shape index: {}]   ;;  %s404_s2 = inlined_call_operand.vmem [shape: s32[16,1], index: 2, kind: input, shape index: {}]   ;;  %s405_s3 = inlined_call_operand.hbm [shape: f32[16,128], index: 3, kind: output, shape index: {}]  }
   0x1   :  { %9 = vsyncpa [#allocation4], 0  ;;  %s336_s12 = smov [#allocation2]   ;;  %s288_s16 = scalar_lea.hbm %s403_s1, 1024 }
   0x2   :  { %s17_s13 = sshll.u32 %s336_s12, 4  ;;  %p289_p0 = scmp.ne.s32.totalorder %s403_s1, %s288_s16  ;;  %s18_s13 = int_to_ptr.vmem [resolvable:$true] %s17_s13 }
   0x3   :  { %p292_p1 = scmp.lt.u32.totalorder %s288_s16, %s403_s1 }
   0x5   :  { %p294_p2 = pnand %p292_p1, %p289_p0 }
   0x7   :  { %297 = shalt.err (!%p294_p2)
}
   0x8   :  { %s298_s21 = scalar_lea.vmem %s18_s13, 1024  ;;  %p303_p4 = scmp.lt.s32.totalorder %s18_s13, %s18_s13 }
   0x9   :  { %p299_p3 = scmp.ne.s32.totalorder %s18_s13, %s298_s21  ;;  %p304_p5 = scmp.lt.s32.totalorder %s298_s21, %s298_s21 }
   0xb   :  { %p305_p6 = por %p304_p5, %p303_p4 }
   0xd   :  { %p306_p7 = pnand %p305_p6, %p299_p3 }
   0xf   :  { %309 = shalt.err (!%p306_p7)
}
  0x10   :  { %s337_s22 = smov 64   ;;  %s338_s23 = smov 4  }
  0x11   :  { %23 = dma.hbm_to_vmem [thread:$0]  %s403_s1, 1024, %s18_s13, [#allocation3], %s337_s22, %s337_s22, %s338_s23  }
  0x12   :  { %332 = dma.done.wait [#allocation3], 1024  }
  0x13   :  { %333 = vsyncadd [#allocation3], 4294966272  ;;  %v339_v0 = vmov 0.0   ;;  %vm340_vm0 = vmmov 0   ;;  %v341_v1 = vmov 0   ;;  %v275_v2 = vld [vmem:[#allocation2] sm:$0xff]   ;;  %v146_v13 = vlaneseq }
  0x14   :  { %245 = vmatprep.subr.bf16.mxu0 %v339_v0  ;;  %261 = vmatprep.mubr.msk.bf16.mxu0 %vm340_vm0, %v339_v0  ;;  %v276_v3 = vld [vmem:[#allocation2 + $0x8] sm:$0xff]   ;;  %v277_v4 = vld [vmem:[#allocation2 + $0x10] sm:$0xff]   ;;  %v143_v5 = vld [vmem:[%s404_s2] sm:$0xff] }
  0x15   :  { %274 = vset.pattern.permute.xlu0 %v341_v1  ;;  %246 = vmatpush3.bf16.msra.mxu0 %v275_v2  ;;  %v278_v6 = vld [vmem:[#allocation2 + $0x18] sm:$0xff]   ;;  %v144_v7 = vld [vmem:[%s404_s2 + $0x8] sm:$0xff]  ;;  %v279_v8 = vld [vmem:[#allocation2 + $0x20] sm:$0xff]   ;;  %v147_v14 = vand.u32 127, %v146_v13 }
  0x16   :  { %247 = vmatprep.subr.bf16.mxu0 %v339_v0  ;;  %151 = vperm.xlu0 %274, %v143_v5   ;;  %v280_v9 = vld [vmem:[#allocation2 + $0x28] sm:$0xff]   ;;  %v281_v10 = vld [vmem:[#allocation2 + $0x30] sm:$0xff]   ;;  %v282_v11 = vld [vmem:[#allocation2 + $0x38] sm:$0xff]  }
  0x17   :  { %v283_v12 = vld [vmem:[%s402_s0] sm:$0xff]   ;;  %s342_s0 = smov [#allocation5]  }
  0x18   :  { %s211_s2 = sshll.u32 %s342_s0, 4  ;;  %s212_s2 = int_to_ptr.vmem [resolvable:$true] %s211_s2 }
  0x19   :  { %248 = vmatpush3.bf16.msra.mxu0 %v276_v3  ;;  %s310_s4 = scalar_lea.vmem %s212_s2, 256  ;;  %p315_p9 = scmp.lt.s32.totalorder %s212_s2, %s212_s2 }
  0x1a   :  { %249 = vmatprep.subr.bf16.mxu0 %v339_v0  ;;  %154 = vperm.xlu0 %274, %v144_v7   ;;  %p311_p8 = scmp.ne.s32.totalorder %s212_s2, %s310_s4  ;;  %p316_p10 = scmp.lt.s32.totalorder %s310_s4, %s310_s4 }
  0x1c   :  { %p317_p11 = por %p316_p10, %p315_p9 }
  0x1d   :  { %250 = vmatpush3.bf16.msra.mxu0 %v277_v4 }
  0x1e   :  { %251 = vmatprep.subr.bf16.mxu0 %v339_v0  ;;  %p318_p12 = pnand %p317_p11, %p311_p8 }
  0x21   :  { %252 = vmatpush3.bf16.msra.mxu0 %v278_v6 }
  0x22   :  { %253 = vmatprep.subr.bf16.mxu0 %v339_v0 }
  0x25   :  { %254 = vmatpush3.bf16.msra.mxu0 %v279_v8 }
  0x26   :  { %255 = vmatprep.subr.bf16.mxu0 %v339_v0 }
  0x29   :  { %256 = vmatpush3.bf16.msra.mxu0 %v280_v9 }
  0x2a   :  { %257 = vmatprep.subr.bf16.mxu0 %v339_v0 }
  0x2d   :  { %258 = vmatpush3.bf16.msra.mxu0 %v281_v10 }
  0x2e   :  { %259 = vmatprep.subr.bf16.mxu0 %v339_v0 }
  0x31   :  { %260 = vmatpush3.bf16.msra.mxu0 %v282_v11 }
  0x34   :  { %262 = vmatmul.mubr.bf16.vlgmr.msra.gmra.mrb[0].mxu0 %v283_v12 }
  0x95   :  { %v152_v15 = vpop.permute.xlu0 %151 }
  0x96   :  { %vm156_vm1 = vcmp.eq.s32.totalorder %v147_v14, %v152_v15 }
  0x99   :  { %v155_v17 = vpop.permute.xlu0 %154 }
  0x9a   :  { %vm157_vm2 = vcmp.eq.s32.totalorder %v147_v14, %v155_v17 }
 0x107   :  { %v136_v16 = vpop.f32.mrb[0].mxu0 }
 0x108   :  { %v263_v18 = vpop.f32.mrb[1].mxu0  ;;  %v158_v19 = vsel %vm156_vm1, %v136_v16, 0.0 }
 0x109   :  { %160 = vadd.xlane.f32.xlu1 %v158_v19  ;;  %v139_v20 = vpop.f32.mrb[2].mxu0 }
 0x10a   :  { %v264_v21 = vpop.f32.mrb[3].mxu0  ;;  %v159_v22 = vsel %vm157_vm2, %v139_v20, 0.0 }
 0x10d   :  { %162 = vadd.xlane.f32.xlu1 %v159_v22 }
 0x196   :  { %v161_v23 = vpop.xlane.xlu1 %160 }
 0x197   :  { %v164_v24 = vmul.f32 %v161_v23, %v161_v23  ;;  %v232_v38 = vadd.f32 0.9553365, %v161_v23  ;;  %v186_v40 = vmul.f32 0.9553365, %v161_v23  ;;  %v234_v44 = vadd.f32 -0.08865606, %v161_v23 }
 0x199   :  { %v166_v25 = vsub.f32 1.0, %v164_v24  ;;  %vm194_vm6 = vcmp.gt.f32.partialorder %v232_v38, 0.0 }
 0x19a   :  { %v163_v26 = vpop.xlane.xlu1 %162 }
 0x19b   :  { %v168_v27 = vmax.f32 %v166_v25, 0.0  ;;  %v165_v28 = vmul.f32 %v163_v26, %v163_v26  ;;  %v233_v49 = vadd.f32 0.9553365, %v163_v26  ;;  %v187_v50 = vmul.f32 0.9553365, %v163_v26 }
 0x19c   :  { %v235_v55 = vadd.f32 -0.08865606, %v163_v26 }
 0x19d   :  { %v170_v29 = vmin.f32 %v168_v27, 1.0  ;;  %v167_v30 = vsub.f32 1.0, %v165_v28  ;;  %vm195_vm8 = vcmp.gt.f32.partialorder %v233_v49, 0.0 }
 0x19f   :  { %284 = vrsqrt.f32 %v170_v29  ;;  %v169_v31 = vmax.f32 %v167_v30, 0.0  ;;  %vm174_vm3 = vcmp.eq.f32.partialorder %v170_v29, inf  ;;  %v177_v35 = vand.u32 2147483648, %v170_v29 }
 0x1a0   :  { %vm176_vm4 = vcmp.eq.f32.partialorder %v170_v29, 0.0 }
 0x1a1   :  { %v171_v32 = vmin.f32 %v169_v31, 1.0 }
 0x1a3   :  { %286 = vrsqrt.f32 %v171_v32  ;;  %vm181_vm5 = vcmp.eq.f32.partialorder %v171_v32, inf  ;;  %v184_v45 = vand.u32 2147483648, %v171_v32  ;;  %vm183_vm7 = vcmp.eq.f32.partialorder %v171_v32, 0.0 }
 0x1a9   :  { %v285_v33 = vpop.eup %284 }
 0x1aa   :  { %v173_v34 = vmul.f32 %v285_v33, %v170_v29 }
 0x1ac   :  { %v175_v36 = vsel %vm174_vm3, %v170_v29, %v173_v34 }
 0x1ad   :  { %v178_v37 = vsel %vm176_vm4, %v177_v35, %v175_v36  ;;  %v287_v39 = vpop.eup %286 }
 0x1ae   :  { %v188_v41 = vmul.f32 0.29552022, %v178_v37  ;;  %v180_v42 = vmul.f32 %v287_v39, %v171_v32 }
 0x1b0   :  { %v190_v43 = vsub.f32 %v186_v40, %v188_v41  ;;  %v182_v46 = vsel %vm181_vm5, %v171_v32, %v180_v42 }
 0x1b1   :  { %v185_v48 = vsel %vm183_vm7, %v184_v45, %v182_v46 }
 0x1b2   :  { %v198_v47 = vsel %vm194_vm6, %v190_v43, %v234_v44  ;;  %v189_v51 = vmul.f32 0.29552022, %v185_v48 }
 0x1b3   :  { %v200_v52 = vsel %vm156_vm1, %v198_v47, %v136_v16 }
 0x1b4   :  { %v202_v53 = vmul.f32 15.0, %v200_v52  ;;  %v191_v54 = vsub.f32 %v187_v50, %v189_v51 }
 0x1b6   :  { %204 = vst [vmem:[#allocation5] sm:$0xff] %v202_v53  ;;  %v199_v56 = vsel %vm195_vm8, %v191_v54, %v235_v55 }
 0x1b7   :  { %v201_v57 = vsel %vm157_vm2, %v199_v56, %v139_v20 }
 0x1b8   :  { %v203_v58 = vmul.f32 15.0, %v201_v57 }
 0x1ba   :  { %205 = vst [vmem:[#allocation5 + $0x8] sm:$0xff] %v203_v58 }
 0x1bb   :  { %321 = shalt.err (!%p318_p12)
}
 0x1bc   :  { %s322_s7 = scalar_lea.hbm %s405_s3, 256 }
 0x1bd   :  { %p323_p13 = scmp.ne.s32.totalorder %s405_s3, %s322_s7  ;;  %p326_p0 = scmp.lt.u32.totalorder %s322_s7, %s405_s3 }
 0x1bf   :  { %p328_p1 = pnand %p326_p0, %p323_p13 }
 0x1c1   :  { %331 = shalt.err (!%p328_p1)
}
 0x1c2   :  { %s343_s12 = smov 128   ;;  %s344_s13 = smov 8  }
 0x1c3   :  { %217 = dma.vmem_to_hbm [thread:$0]  %s212_s2, 256, %s405_s3, [#allocation4], %s343_s12, %s343_s12, %s344_s13  }
 0x1c4   :  { %334 = dma.done.wait [#allocation4], 256  }
 0x1c5   :  { %335 = vsyncadd [#allocation4], 4294967040 }
 0x1c6   :  { %221 = vsyncpa [#allocation3], 1 }
 0x1c7   :  { %222 = vsyncpa [#allocation4], 1 }

</bundles_post_ra>
